<compile_context>
chip_gen: v7x
topology: tpu7x:2x2x1
jax: 0.10.0
libtpu: 0.0.40
codegen_flags: <defaults>
</compile_context>

<pallas_src>
import functools

import jax
import jax.numpy as jnp
from jax.experimental import pallas as pl
from jax.experimental.pallas import tpu as pltpu


def _focal_kernel(alpha_ref, x_ref, t_ref, o_ref, *, gamma, num_classes):
    """Per-sample focal loss on one (Bb, C, TL) block.

    alpha_ref : SMEM (C,) f32   -- scalar-prefetched per-class weights.
    x_ref     : VMEM (Bb, C, TL) logits (classes on sublanes, samples on lanes).
    t_ref     : VMEM (Bb, 1, TL) int32 target class per sample.
    o_ref     : VMEM (Bb, 1, TL) f32 per-sample focal loss.
    """
    x = x_ref[...].astype(jnp.float32)                      # (Bb, C, TL)
    t = t_ref[...]                                          # (Bb, 1, TL)

    # log-softmax over the class (sublane) axis, evaluated only at the target.
    m = jnp.max(x, axis=1, keepdims=True)                   # (Bb, 1, TL)
    e = jnp.exp(x - m)                                      # (Bb, C, TL)  C EUP exps
    s = jnp.sum(e, axis=1, keepdims=True)                   # (Bb, 1, TL)

    cls = jax.lax.broadcasted_iota(jnp.int32, x.shape, 1)   # (Bb, C, TL)
    onehot = (cls == t).astype(jnp.float32)                 # (Bb, C, TL)

    x_t = jnp.sum(x * onehot, axis=1, keepdims=True)        # target logit
    e_t = jnp.sum(e * onehot, axis=1, keepdims=True)        # exp(x_t - m)

    # alpha[target]: reuse the one-hot; alpha scalars come straight from SMEM
    # (no per-sample alpha array in HBM, no extra DMA stream).
    a = alpha_ref[0] * onehot[:, 0:1, :]                    # (Bb, 1, TL)
    for c in range(1, num_classes):
        a = a + alpha_ref[c] * onehot[:, c:c + 1, :]

    log_p = (x_t - m) - jnp.log(s)                          # log softmax at target
    one_minus = (s - e_t) / s                               # 1 - p, no 1-exp() cancel

    g = float(gamma)
    if g >= 0.0 and g == int(g):
        focal = jnp.ones_like(one_minus)
        for _ in range(int(g)):                             # gamma=2 -> pure VALU muls
            focal = focal * one_minus
    else:
        focal = jnp.power(one_minus, g)                     # non-integer gamma fallback

    # NOTE: out-of-range targets (t < 0 or t >= C) give an all-zero one-hot and
    # a silently-zero loss here; PyTorch's scatter_ would raise instead.
    o_ref[...] = (-a * focal * log_p).astype(o_ref.dtype)


def _vmem_bytes_per_col(C, x_itemsize):
    # double-buffered x/t/out streams + in-kernel f32 temporaries (e, onehot,
    # products) + a handful of (Bb, 1, TL) rows.
    return 2 * (C * x_itemsize + 8) + 4 * (3 * C + 8)


def _pick_blocks(B, C, HWp, x_itemsize, *, max_tile=512 * 1024,
                 vmem_budget=24 * 1024 * 1024, target_dma=2 * 1024 * 1024):
    """Choose (Bb, tile_hw).  HWp is 128-divisible, or small enough that a
    full-extent block fits the VMEM budget (wrapper guarantees this)."""
    vmem_col = _vmem_bytes_per_col(C, x_itemsize)
    dma_col = C * x_itemsize + 8                     # x in + t in + loss out
    max_cols = max(128, vmem_budget // vmem_col)

    if HWp % 128 == 0:
        tile = min(max_tile, max_cols, HWp)
        tile = max(128, (tile // 128) * 128)
        while HWp % tile != 0:                       # terminates: 128 divides HWp
            tile -= 128
    else:
        tile = HWp                                   # full-extent block (fits budget)

    # Grow the batch block until per-step DMA is big enough to amortize the
    # fixed per-grid-step overhead, staying inside the VMEM budget.
    Bb = 1
    for cand in range(1, B + 1):
        if B % cand != 0:
            continue
        if cand * tile > max_cols:
            break
        Bb = cand
        if cand * tile * dma_col >= target_dma:
            break

    # Keep >= 2 grid steps along the parallel axes so both v7x TCs get work.
    while Bb > 1 and (B // Bb) * (HWp // tile) < 2:
        Bb -= 1
        while B % Bb != 0:
            Bb -= 1
    return Bb, tile


def focal_loss_pallas(x_nchw, targets_bhw, alpha, gamma=2):
    """Pallas forward of FocalLoss.forward.

    x_nchw      : (B, C, H, W) float logits (f32 or bf16, passed through as-is).
    targets_bhw : (B, H, W) integer class ids.
    alpha       : (C,) or (C, 1) per-class weights.
    Returns (B*H*W, 1) f32 per-sample loss; sample order matches the PyTorch
    transpose_move_to_end(inputs, 1).view(-1, C) flattening.
    """
    B, C, H, W = x_nchw.shape
    HW = H * W

    x = x_nchw.reshape(B, C, HW)                          # free reshape, NCHW kept
    t = targets_bhw.reshape(B, 1, HW).astype(jnp.int32)
    alpha_c = jnp.asarray(alpha, dtype=jnp.float32).reshape(-1)

    vmem_budget = 24 * 1024 * 1024                        # safe for v7x's 64 MiB VMEM
    itemsize = x.dtype.itemsize
    vmem_col = _vmem_bytes_per_col(C, itemsize)

    # Non-128-divisible spatial extent: only fall back to a full-extent block if
    # it fits the budget; otherwise pad to a multiple of 128 (pad sliced off).
    HWp = HW
    if HW % 128 != 0 and HW * vmem_col > vmem_budget:
        HWp = ((HW + 127) // 128) * 128
        pad = HWp - HW
        x = jnp.pad(x, ((0, 0), (0, 0), (0, pad)))
        t = jnp.pad(t, ((0, 0), (0, 0), (0, pad)))        # class 0 in the pad region

    Bb, tile = _pick_blocks(B, C, HWp, itemsize, vmem_budget=vmem_budget)
    grid = (B // Bb, HWp // tile)

    kernel = functools.partial(_focal_kernel, gamma=gamma, num_classes=C)

    out = pl.pallas_call(
        kernel,
        out_shape=jax.ShapeDtypeStruct((B, 1, HWp), jnp.float32),
        grid_spec=pltpu.PrefetchScalarGridSpec(
            num_scalar_prefetch=1,                        # alpha -> SMEM
            grid=grid,
            in_specs=[
                pl.BlockSpec((Bb, C, tile), lambda b, j, a_ref: (b, 0, j)),  # logits
                pl.BlockSpec((Bb, 1, tile), lambda b, j, a_ref: (b, 0, j)),  # targets
            ],
            out_specs=pl.BlockSpec((Bb, 1, tile), lambda b, j, a_ref: (b, 0, j)),
        ),
        compiler_params=pltpu.CompilerParams(
            dimension_semantics=("parallel", "parallel"),
            vmem_limit_bytes=32 * 1024 * 1024,
        ),
    )(alpha_c, x, t)

    if HWp != HW:
        out = out[:, :, :HW]
    # Module returns per-sample (N, 1) loss; a reduced (sum/mean) variant could
    # fuse the reduction in-kernel instead and skip this write entirely.
    return out.reshape(-1, 1)


def focal_loss_reference(x_nchw, targets_bhw, alpha, gamma=2):
    C = x_nchw.shape[1]
    logits = jnp.transpose(x_nchw, (0, 2, 3, 1)).reshape(-1, C).astype(jnp.float32)
    t = targets_bhw.reshape(-1)
    p = jax.nn.softmax(logits, axis=1)
    probs = jnp.take_along_axis(p, t.reshape(-1, 1), axis=1)
    alpha_c = jnp.asarray(alpha, dtype=jnp.float32).reshape(-1)
    al = alpha_c[t].reshape(-1, 1)
    return -al * jnp.power(1.0 - probs, gamma) * jnp.log(probs)


if __name__ == "__main__":
    # Module defaults: class_num=2, alpha=None -> alpha = ones((2, 1)), gamma=2.
    class_num = 2
    gamma = 2
    B, C, H, W = 2, class_num, 16, 16

    key = jax.random.PRNGKey(0)
    kx, kt = jax.random.split(key)
    x_nchw = jax.random.normal(kx, (B, C, H, W), dtype=jnp.float32)
    targets = jax.random.randint(kt, (B, H, W), 0, class_num, dtype=jnp.int32)

    alpha_default = jnp.ones((class_num, 1), dtype=jnp.float32)
    loss = jax.block_until_ready(
        focal_loss_pallas(x_nchw, targets, alpha_default, gamma=gamma))
    ref = focal_loss_reference(x_nchw, targets, alpha_default, gamma=gamma)
    assert loss.shape == (B * H * W, 1)
    assert jnp.allclose(loss, ref, atol=1e-5, rtol=1e-5), "mismatch (alpha=1)"

    # Non-uniform alpha exercises the in-kernel alpha[target] path.
    alpha_custom = jnp.array([[0.25], [0.75]], dtype=jnp.float32)
    loss2 = jax.block_until_ready(
        focal_loss_pallas(x_nchw, targets, alpha_custom, gamma=gamma))
    ref2 = focal_loss_reference(x_nchw, targets, alpha_custom, gamma=gamma)
    assert jnp.allclose(loss2, ref2, atol=1e-5, rtol=1e-5), "mismatch (custom alpha)"

    print("KERNEL_OK")
</pallas_src>

<mosaic_0001>
module attributes {stable_mosaic.version = 11 : i64} {
  func.func @_focal_kernel(%arg0: i32, %arg1: i32, %arg2: memref<2xf32, #tpu.memory_space<smem>>, %arg3: memref<1x2x256xf32, #tpu.memory_space<vmem>>, %arg4: memref<1x1x256xi32, #tpu.memory_space<vmem>>, %arg5: memref<1x1x256xf32, #tpu.memory_space<vmem>>) attributes {dimension_semantics = [#tpu.dimension_semantics<parallel>, #tpu.dimension_semantics<parallel>], iteration_bounds = array<i64: 2, 1>, scalar_prefetch = 1 : i64, scratch_operands = 0 : i64, tpu.core_type = #tpu.core_type<tc>, window_params = [{transform_indices = @transform_0, window_bounds = array<i64: 1, 2, 256>}, {transform_indices = @transform_1, window_bounds = array<i64: 1, 1, 256>}, {transform_indices = @transform_2, window_bounds = array<i64: 1, 1, 256>}]} {
    %c0 = arith.constant 0 : index
    %c0_0 = arith.constant 0 : index
    %c0_1 = arith.constant 0 : index
    %0 = vector.load %arg3[%c0, %c0_0, %c0_1] : memref<1x2x256xf32, #tpu.memory_space<vmem>>, vector<1x2x256xf32>
    %c0_2 = arith.constant 0 : index
    %c0_3 = arith.constant 0 : index
    %c0_4 = arith.constant 0 : index
    %1 = vector.load %arg4[%c0_2, %c0_3, %c0_4] : memref<1x1x256xi32, #tpu.memory_space<vmem>>, vector<1x1x256xi32>
    %cst = arith.constant dense<0xFF800000> : vector<1x256xf32>
    %2 = vector.multi_reduction <maximumf>, %0, %cst [1] : vector<1x2x256xf32> to vector<1x256xf32>
    %3 = vector.shape_cast %2 : vector<1x256xf32> to vector<1x1x256xf32>
    %4 = vector.broadcast %3 : vector<1x1x256xf32> to vector<1x2x256xf32>
    %5 = arith.subf %0, %4 : vector<1x2x256xf32>
    %6 = math.exp %5 : vector<1x2x256xf32>
    %cst_5 = arith.constant dense<0.000000e+00> : vector<1x256xf32>
    %7 = vector.multi_reduction <add>, %6, %cst_5 [1] : vector<1x2x256xf32> to vector<1x256xf32>
    %8 = vector.shape_cast %7 : vector<1x256xf32> to vector<1x1x256xf32>
    %9 = tpu.iota {dimensions = array<i32: 1>} : vector<1x2x256xi32>
    %10 = vector.broadcast %1 : vector<1x1x256xi32> to vector<1x2x256xi32>
    %11 = arith.cmpi eq, %9, %10 : vector<1x2x256xi32>
    %12 = arith.extui %11 : vector<1x2x256xi1> to vector<1x2x256xi32>
    %13 = arith.sitofp %12 : vector<1x2x256xi32> to vector<1x2x256xf32>
    %14 = arith.mulf %0, %13 : vector<1x2x256xf32>
    %cst_6 = arith.constant dense<0.000000e+00> : vector<1x256xf32>
    %15 = vector.multi_reduction <add>, %14, %cst_6 [1] : vector<1x2x256xf32> to vector<1x256xf32>
    %16 = vector.shape_cast %15 : vector<1x256xf32> to vector<1x1x256xf32>
    %17 = arith.mulf %6, %13 : vector<1x2x256xf32>
    %cst_7 = arith.constant dense<0.000000e+00> : vector<1x256xf32>
    %18 = vector.multi_reduction <add>, %17, %cst_7 [1] : vector<1x2x256xf32> to vector<1x256xf32>
    %19 = vector.shape_cast %18 : vector<1x256xf32> to vector<1x1x256xf32>
    %c0_8 = arith.constant 0 : index
    %20 = memref.load %arg2[%c0_8] : memref<2xf32, #tpu.memory_space<smem>>
    %21 = vector.extract_strided_slice %13 {offsets = [0, 0, 0], sizes = [1, 1, 256], strides = [1, 1, 1]} : vector<1x2x256xf32> to vector<1x1x256xf32>
    %22 = vector.broadcast %20 : f32 to vector<1x1x256xf32>
    %23 = arith.mulf %22, %21 : vector<1x1x256xf32>
    %c1 = arith.constant 1 : index
    %24 = memref.load %arg2[%c1] : memref<2xf32, #tpu.memory_space<smem>>
    %25 = vector.extract_strided_slice %13 {offsets = [0, 1, 0], sizes = [1, 1, 256], strides = [1, 1, 1]} : vector<1x2x256xf32> to vector<1x1x256xf32>
    %26 = vector.broadcast %24 : f32 to vector<1x1x256xf32>
    %27 = arith.mulf %26, %25 : vector<1x1x256xf32>
    %28 = arith.addf %23, %27 : vector<1x1x256xf32>
    %29 = arith.subf %16, %3 : vector<1x1x256xf32>
    %30 = math.log %8 : vector<1x1x256xf32>
    %31 = arith.subf %29, %30 : vector<1x1x256xf32>
    %32 = arith.subf %8, %19 : vector<1x1x256xf32>
    %33 = arith.divf %32, %8 : vector<1x1x256xf32>
    %cst_9 = arith.constant 1.000000e+00 : f32
    %34 = vector.broadcast %cst_9 : f32 to vector<1x1x256xf32>
    %35 = arith.mulf %34, %33 : vector<1x1x256xf32>
    %36 = arith.mulf %35, %33 : vector<1x1x256xf32>
    %cst_10 = arith.constant 0.000000e+00 : f32
    %37 = vector.broadcast %cst_10 : f32 to vector<1x1x256xf32>
    %38 = arith.subf %37, %28 : vector<1x1x256xf32>
    %39 = arith.mulf %38, %36 : vector<1x1x256xf32>
    %40 = arith.mulf %39, %31 : vector<1x1x256xf32>
    %c0_11 = arith.constant 0 : index
    %c0_12 = arith.constant 0 : index
    %c0_13 = arith.constant 0 : index
    %41 = vector.load %arg5[%c0_11, %c0_12, %c0_13] : memref<1x1x256xf32, #tpu.memory_space<vmem>>, vector<1x1x256xf32>
    tpu.vector_store %arg5[%c0_11, %c0_12, %c0_13], %40 {strides = array<i32>} : memref<1x1x256xf32, #tpu.memory_space<vmem>>, vector<1x1x256xf32>,
    return
  }
  func.func @transform_0(%arg0: i32, %arg1: i32, %arg2: memref<2xf32, #tpu.memory_space<smem>>) -> (i32, i32, i32) {
    %c0_i32 = arith.constant 0 : i32
    %c0_i32_0 = arith.constant 0 : i32
    return %arg0, %c0_i32, %arg1 : i32, i32, i32
  }
  func.func @transform_1(%arg0: i32, %arg1: i32, %arg2: memref<2xf32, #tpu.memory_space<smem>>) -> (i32, i32, i32) {
    %c0_i32 = arith.constant 0 : i32
    %c0_i32_0 = arith.constant 0 : i32
    return %arg0, %c0_i32, %arg1 : i32, i32, i32
  }
  func.func @transform_2(%arg0: i32, %arg1: i32, %arg2: memref<2xf32, #tpu.memory_space<smem>>) -> (i32, i32, i32) {
    %c0_i32 = arith.constant 0 : i32
    %c0_i32_0 = arith.constant 0 : i32
    return %arg0, %c0_i32, %arg1 : i32, i32, i32
  }
}

</mosaic_0001>

<bundles_post_ra>
// kernel: tpu_custom_call.1
= control target key start
LH: loop header
LB: loop body
LE: loop exit
PB: predicated region body
PF: predicated region fallthrough
CT: control target
= control target key end

     0   :  { %s1022_s0 = inlined_call_operand.hbm [shape: f32[2], index: 0, kind: input, shape index: {}]   ;;  %s1023_s1 = inlined_call_operand.hbm [shape: f32[2,2,256], index: 1, kind: input, shape index: {}]   ;;  %s1024_s2 = inlined_call_operand.vmem [shape: s32[2,1,256], index: 2, kind: input, shape index: {}]   ;;  %s1025_s3 = inlined_call_operand.hbm [shape: f32[2,1,256], index: 3, kind: output, shape index: {}]  }
   0x1   :  { %s638_s14 = scalar_lea.hbm %s1022_s0, 16 }
   0x2   :  { %p639_p0 = scmp.ne.s32.totalorder %s1022_s0, %s638_s14  ;;  %p642_p1 = scmp.lt.u32.totalorder %s638_s14, %s1022_s0 }
   0x4   :  { %p644_p2 = pnand %p642_p1, %p639_p0 }
   0x6   :  { %647 = shalt.err (!%p644_p2)  }
   0x7   :  { %s764_s19 = smov [#allocation3]  }
   0x8   :  { %9 = dma.hbm_to_smem %s1022_s0, 16, %s764_s19, [#allocation2] }
   0x9   :  { %730 = dma.done.wait [#allocation2], 16 }
   0xa   :  { %731 = vsyncadd [#allocation2], 4294967280 }
   0xb   :  { %11 = sfence }
   0xc   :  { %12 = vsyncpa [#allocation5], 0 }
   0xd   :  { %14 = vsyncpa [#allocation5 + $0x1], 0 }
   0xe   :  { %15 = vsyncpa [#allocation6], 0 }
   0xf   :  { %17 = vsyncpa [#allocation6 + $0x1], 0  ;;  %s802_s22 = smov 0   ;;  %s804_s23 = smov 0  }
  0x10   :  { %s806_s24 = smov 0   ;;  %s808_s25 = smov 0  }
  0x11   :  { %s810_s26 = smov 0   ;;  %s812_s27 = smov 0  }
  0x12 LB: > { %s541_s0 = sadd.s32 4294967295, %s762_s27   ;;  %s542_s28 = sadd.s32 4294967294, %s762_s27   ;;  %s762_s27 = sphi %s812_s27, %s23_s27   ;;  %s758_s26 = sphi %s810_s26, %s1041_s26   ;;  %s754_s25 = sphi %s808_s25, %s1040_s25   ;;  %s750_s24 = sphi %s806_s24, %s1039_s24   ;;  %s746_s23 = sphi %s804_s23, %s1038_s23   ;;  %s742_s22 = sphi %s802_s22, %s1037_s22  }
  0x13   : > { %s35_s29 = sadd.s32 1, %s758_s26  ;;  %s44_s30 = sadd.s32 1, %s750_s24 }
  0x14   : > { %p37_p3 = scmp.ge.s32.totalorder %s35_s29, 2  ;;  %p51_p4 = scmp.ne.s32.totalorder %s750_s24, %s746_s23 }
  0x15   : > { %p52_p5 = scmp.eq.s32.totalorder %s762_s27, 0  ;;  %p57_p6 = scmp.ne.s32.totalorder %s746_s23, %s742_s22 }
  0x16   : > { %s1043_s29 = smov (%p37_p3, %s35_s29), 0  ;;  %p58_p8 = scmp.eq.s32.totalorder %s541_s0, 0 }
  0x17   : > { %p843_p7 = por %p52_p5, %p51_p4  ;;  %s39_s5 = ssub.s32 %s758_s26, %s1043_s29 }
  0x18   : > { %p111_p9 = scmp.eq.s32.totalorder %s541_s0, 1  ;;  %p42_p10 = scmp.eq.s32.totalorder %s39_s5, 0 }
  0x19   : > { %p849_p11 = por %p58_p8, %p57_p6  ;;  %p117_p13 = scmp.eq.s32.totalorder %s542_s28, 1 }
  0x1a   : > { %p853_p12 = por %p111_p9, %p51_p4  ;;  %p574_p2 = scmp.lt.s32.totalorder %s762_s27, 2 }
  0x1b   : > { %s858_s8 = scalar_select %p42_p10, %s750_s24, %s44_s30  }
  0x1c   : > { %s1029_s7 = scalar_select %p853_p12, 1, 0 }
  0x1d   : > { %p860_p0 = por %p117_p13, %p57_p6  ;;  %s137_s10 = sand.u32 1, %s750_s24  }
  0x1e   : > { %s545_s11 = sshll.u32 %s137_s10, 2  ;;  %s560_s12 = sshll.u32 %s758_s26, 6 }
  0x1f   : > { %s1030_s9 = scalar_select %p860_p0, 1, 0 }
  0x20   : > { %s871_s15 = scalar_lea.hbm %s1023_s1, %s560_s12  ;;  %s141_s16 = scalar_lea.vmem [#allocation4], %s545_s11 }
  0x21   : > { %s151_s17 = sshll.u32 %s141_s16, 4  ;;  %p877_p3 = pnand %p574_p2, %p843_p7  ;;  %s873_s17 = int_to_ptr.vmem [resolvable:$true] %s151_s17 }
  0x22   : > { %s138_s19 = scalar_lea.sflag [#allocation5], %s137_s10  ;;  %s648_s20 = scalar_lea.hbm %s871_s15, 64 }
  0x23   : > { %p649_p6 = scmp.ne.s32.totalorder %s871_s15, %s648_s20  ;;  %p650_p8 = pneg %p877_p3 }
  0x24   : > { %s653_s28 = scalar_lea.hbm %s1023_s1, 128  ;;  %p654_p7 = scmp.lt.u32.totalorder %s871_s15, %s1023_s1 }
  0x25   : > { %p651_p9 = pnand %p650_p8, %p649_p6  ;;  %p655_p13 = scmp.lt.u32.totalorder %s653_s28, %s648_s20 }
  0x26   : > { %p657_p1 = scmp.lt.u32.totalorder %s648_s20, %s871_s15 }
  0x27   : > { %p652_p10 = pneg %p651_p9  ;;  %p656_p2 = por %p655_p13, %p654_p7 }
  0x29   : > { %p658_p4 = por %p657_p1, %p656_p2 }
  0x2b   : > { %p659_p5 = pnand %p658_p4, %p652_p10 }
  0x2d   : > { %662 = shalt.err (!%p659_p5)
}
  0x2e   : > { %s663_s5 = scalar_lea.vmem %s873_s17, 64  ;;  %s765_s10 = smov [#allocation4]  }
  0x2f   : > { %p664_p6 = scmp.ne.s32.totalorder %s873_s17, %s663_s5  ;;  %s668_s11 = sshll.u32 %s765_s10, 4  ;;  %s669_s11 = int_to_ptr.vmem [resolvable:$false] %s668_s11 }
  0x30   : > { %s670_s12 = scalar_lea.vmem %s669_s11, 128  ;;  %p671_p12 = scmp.lt.s32.totalorder %s873_s17, %s669_s11 }
  0x31   : > { %p666_p9 = pnand %p664_p6, %p650_p8  ;;  %p672_p7 = scmp.lt.s32.totalorder %s670_s12, %s663_s5 }
  0x33   : > { %p667_p0 = pneg %p666_p9  ;;  %p673_p13 = por %p672_p7, %p671_p12 }
  0x35   : > { %p674_p1 = pnand %p673_p13, %p667_p0 }
  0x37   : > { %677 = shalt.err (!%p674_p1)
}
  0x38   : > { %569 = dma.hbm_to_vmem [thread:$0]  (!%p877_p3), %s871_s15, 64, %s873_s17, %s138_s19  }
  0x39   : > { %p1032_p4 = scmp.lt.s32.totalorder %s762_s27, 3  ;;  %p1033_p5 = scmp.ge.s32.totalorder %s762_s27, 1 }
  0x3b   : > { %p169_p8 = pnand %p1033_p5, %p1032_p4 }
  0x3c   : > { %s913_s13 = sand.u32 (!%p169_p8), 1, %s746_s23  }
  0x3d   : > { %172 = sbr.rel (%p169_p8) target bundleno = 169 (0xa9), region = 28  ;;  %s549_s14 = sshll.u32 (!%p169_p8), %s913_s13, 2 }
  0x3e   : > { %s175_s16 = scalar_lea.sflag (!%p169_p8), [#allocation5], %s913_s13  ;;  %s178_s20 = scalar_lea.vmem (!%p169_p8), [#allocation4], %s549_s14 }
  0x44   : > { %733 = dma.done.wait (%p849_p11), %s175_s16, 64  }
  0x45   : > { %735 = vsyncadd (%p849_p11), %s175_s16, 4294967232  ;;  %p209_p12 = scmp.lt.s32.totalorder %s754_s25, 1  ;;  %v224_v0 = vlaneseq  ;;  %v766_v1 = vmov 1983009808   ;;  %v218_v6 = vld [vmem:[%s178_s20] sm:$0xf] }
  0x46   : > { %v222_v2 = vunpack.c.l.s4 %v766_v1  ;;  %vm231_vm0 = vcmask 1041408   ;;  %v767_v27 = vmov 0.0   ;;  %s950_s21 = sld [smem:[#allocation3 + $0x1]]  ;;  %s956_s0 = sld [smem:[#allocation3]] }
  0x47   : > { %v923_v3 = vshrl.u32 %v224_v0, 7  ;;  %s210_s15 = scalar_select %p209_p12, %s754_s25, 1  ;;  %vm422_vm3 = vcmp.lt.s32.totalorder %v224_v0, 256 }
  0x48   : > { %v223_v4 = vunpack.c.0.s8 %v222_v2  ;;  %s550_s28 = sshll.u32 %s913_s13, 1  ;;  %s561_s5 = sshll.u32 %s754_s25, 5 }
  0x49   : > { %s551_s17 = sshll.u32 %s210_s15, 1  ;;  %v289_v11 = vsub.s32 0, %v923_v3  ;;  %v293_v12 = vsub.s32 1, %v923_v3  ;;  %s206_s30 = scalar_lea.vmem [#allocation7], %s550_s28 }
  0x4a   : > { %v226_v5 = vsub.s32 %v223_v4, %v923_v3  ;;  %s215_s19 = scalar_lea.vmem %s1024_s2, %s551_s17  ;;  %s442_s4 = sshll.u32 %s206_s30, 4  ;;  %s970_s4 = int_to_ptr.vmem [resolvable:$true] %s442_s4 }
  0x4b   : > { %v219_v13 = vld [vmem:[%s215_s19] sm:$0x3]  ;;  %s975_s12 = scalar_lea.hbm %s1025_s3, %s561_s5  ;;  %s426_s14 = scalar_lea.sflag [#allocation6], %s913_s13 }
  0x4c   : > { %v227_v7 = vrot.slane %v218_v6, %v226_v5  ;;  %v290_v19 = vrot.slane %v219_v13, %v289_v11  ;;  %v294_v20 = vrot.slane %v219_v13, %v293_v12  ;;  %s678_s16 = scalar_lea.vmem %s970_s4, 32  ;;  %p1034_p0 = scmp.ne.s32.totalorder %s1029_s7, 0 }
  0x4d   : > { %p679_p11 = scmp.ne.s32.totalorder %s970_s4, %s678_s16  ;;  %s769_s25 = smov [#allocation7]  }
  0x4e   : > { %v228_v8 = vcombine.high %v227_v7, %v227_v7  ;;  %v232_v9 = vsel %vm231_vm0, %v227_v7, -inf  ;;  %vm295_vm1 = vcmp.eq.s32.totalorder %v923_v3, %v290_v19  ;;  %vm296_vm2 = vcmp.eq.s32.totalorder %v923_v3, %v294_v20  ;;  %s682_s20 = sshll.u32 %s769_s25, 4  ;;  %s683_s20 = int_to_ptr.vmem [resolvable:$false] %s682_s20 }
  0x4f   : > { %v233_v10 = vrot.slane %v232_v9, 4  ;;  %v938_v28 = vsel %vm295_vm1, 1.0, %v767_v27  ;;  %v940_v29 = vsel %vm296_vm2, 1.0, %v767_v27  ;;  %v369_v7 = vstv %s950_s21  ;;  %p680_p3 = pnand %p679_p11, %p1034_p0  ;;  %s684_s15 = scalar_lea.vmem %s683_s20, 64 }
  0x50   : > { %v239_v14 = vsel %vm231_vm0, %v228_v8, -inf  ;;  %v303_v32 = vcombine.low %v938_v28, %v940_v29  ;;  %p685_p2 = scmp.lt.s32.totalorder %s970_s4, %s683_s20  ;;  %p686_p6 = scmp.lt.s32.totalorder %s684_s15, %s678_s16 }
  0x51   : > { %v234_v15 = vmax.f32 %v232_v9, %v233_v10  ;;  %v240_v16 = vrot.slane %v239_v14, 4  ;;  %p681_p10 = pneg %p680_p3 }
  0x52   : > { %v310_v35 = vrot.slane %v303_v32, %v226_v5  ;;  %p687_p9 = por %p686_p6, %p685_p2 }
  0x53   : > { %v235_v17 = vrot.slane %v234_v15, 2  ;;  %v241_v18 = vmax.f32 %v239_v14, %v240_v16 }
  0x54   : > { %v312_v37 = vmul.f32 %v310_v35, %v218_v6  ;;  %p688_p7 = pnand %p687_p9, %p681_p10 }
  0x55   : > { %v236_v21 = vmax.f32 %v234_v15, %v235_v17  ;;  %v242_v22 = vrot.slane %v241_v18, 2  ;;  %v370_v17 = vmul.f32 %v938_v28, %v369_v7 }
  0x56   : > { %v320_v38 = vrot.slane %v312_v37, %v226_v5 }
  0x57   : > { %v237_v23 = vrot.slane %v236_v21, 1  ;;  %v243_v24 = vmax.f32 %v241_v18, %v242_v22  ;;  %v374_v32 = vrot.slane %v370_v17, 1 }
  0x58   : > { %v321_v39 = vcombine.high %v320_v38, %v320_v38  ;;  %v324_v40 = vsel %vm231_vm0, %v320_v38, 0.0 }
  0x59   : > { %v936_v25 = vmax.f32 %v236_v21, %v237_v23  ;;  %v244_v26 = vrot.slane %v243_v24, 1  ;;  %v325_v44 = vrot.slane %v324_v40, 4  ;;  %v365_v21 = vstv %s956_s0 }
  0x5a   : > { %v331_v42 = vsel %vm231_vm0, %v321_v39, 0.0 }
  0x5b   : > { %v942_v30 = vmax.f32 %v243_v24, %v244_v26  ;;  %v332_v48 = vrot.slane %v331_v42, 4  ;;  %v326_v52 = vadd.f32 %v325_v44, %v324_v40  ;;  %v371_v24 = vmul.f32 %v940_v29, %v369_v7 }
  0x5d   : > { %v248_v31 = vcombine.low %v936_v25, %v942_v30  ;;  %v333_v58 = vadd.f32 %v332_v48, %v331_v42  ;;  %v327_v1 = vrot.slane %v326_v52, 2 }
  0x5f   : > { %v255_v33 = vrot.slane %v248_v31, %v226_v5  ;;  %v334_v8 = vrot.slane %v333_v58, 2  ;;  %v328_v15 = vadd.f32 %v327_v1, %v326_v52  ;;  %v366_v31 = vmul.f32 %v938_v28, %v365_v21 }
  0x61   : > { %v257_v34 = vsub.f32 %v218_v6, %v255_v33  ;;  %v335_v19 = vadd.f32 %v334_v8, %v333_v58  ;;  %v329_v22 = vrot.slane %v328_v15, 1  ;;  %v378_v38 = vadd.f32 %v374_v32, %v366_v31 }
  0x63   : > { %v258_v36 = vmul.f32 1.442695, %v257_v34  ;;  %v336_v26 = vrot.slane %v335_v19, 1  ;;  %v330_v33 = vadd.f32 %v329_v22, %v328_v15  ;;  %v396_v48 = vsub.f32 0.0, %v378_v38 }
  0x65   : > { %628 = vpow2.f32 %v258_v36  ;;  %v375_v36 = vrot.slane %v371_v24, 1  ;;  %v337_v37 = vadd.f32 %v336_v26, %v335_v19  ;;  %v380_v42 = vsub.f32 %v330_v33, %v936_v25 }
  0x67   : > { %v381_v28 = vsub.f32 %v337_v37, %v942_v30 }
  0x6f   : > { %v629_v41 = vpop.eup %628 }
  0x70   : > { %v267_v43 = vrot.slane %v629_v41, %v226_v5  ;;  %v338_v45 = vmul.f32 %v629_v41, %v310_v35  ;;  %v367_v35 = vmul.f32 %v940_v29, %v365_v21 }
  0x72   : > { %v268_v46 = vcombine.high %v267_v43, %v267_v43  ;;  %v271_v47 = vsel %vm231_vm0, %v267_v43, 0.0  ;;  %v346_v49 = vrot.slane %v338_v45, %v226_v5  ;;  %v379_v41 = vadd.f32 %v375_v36, %v367_v35 }
  0x73   : > { %v272_v50 = vrot.slane %v271_v47, 4 }
  0x74   : > { %v278_v51 = vsel %vm231_vm0, %v268_v46, 0.0  ;;  %v347_v53 = vcombine.high %v346_v49, %v346_v49  ;;  %v350_v54 = vsel %vm231_vm0, %v346_v49, 0.0  ;;  %v768_v49 = vmov 1966171168  }
  0x75   : > { %v273_v55 = vadd.f32 %v272_v50, %v271_v47  ;;  %v279_v56 = vrot.slane %v278_v51, 4  ;;  %v351_v57 = vrot.slane %v350_v54, 4  ;;  %v406_v50 = vunpack.c.l.s4 %v768_v49 }
  0x76   : > { %v357_v59 = vsel %vm231_vm0, %v347_v53, 0.0 }
  0x77   : > { %v274_v60 = vrot.slane %v273_v55, 2  ;;  %v280_v61 = vadd.f32 %v279_v56, %v278_v51  ;;  %v352_v62 = vadd.f32 %v351_v57, %v350_v54  ;;  %v358_v63 = vrot.slane %v357_v59, 4 }
  0x78   : > { %v407_v58 = vunpack.c.0.s8 %v406_v50 }
  0x79   : > { %v275_v2 = vadd.f32 %v274_v60, %v273_v55  ;;  %v281_v4 = vrot.slane %v280_v61, 2  ;;  %v353_v5 = vrot.slane %v352_v62, 2  ;;  %v359_v6 = vadd.f32 %v358_v63, %v357_v59 }
  0x7a   : > { %v397_v55 = vsub.f32 0.0, %v379_v41 }
  0x7b   : > { %v276_v9 = vrot.slane %v275_v2, 1  ;;  %v282_v10 = vadd.f32 %v281_v4, %v280_v61  ;;  %v354_v11 = vadd.f32 %v353_v5, %v352_v62  ;;  %v360_v12 = vrot.slane %v359_v6, 2 }
  0x7c   : > { %v410_v61 = vsub.s32 %v407_v58, %v923_v3 }
  0x7d   : > { %v277_v13 = vadd.f32 %v276_v9, %v275_v2  ;;  %v283_v14 = vrot.slane %v282_v10, 1  ;;  %v361_v16 = vadd.f32 %v360_v12, %v359_v6  ;;  %v355_v20 = vrot.slane %v354_v11, 1 }
  0x7f   : > { %v284_v18 = vadd.f32 %v283_v14, %v282_v10  ;;  %630 = vlog2.f32 %v277_v13  ;;  %v362_v23 = vrot.slane %v361_v16, 1  ;;  %v356_v27 = vadd.f32 %v355_v20, %v354_v11 }
  0x80   : > { %632 = vrcp.f32 %v277_v13 }
  0x81   : > { %634 = vlog2.f32 %v284_v18  ;;  %v363_v34 = vadd.f32 %v362_v23, %v361_v16  ;;  %v388_v39 = vsub.f32 %v277_v13, %v356_v27 }
  0x82   : > { %636 = vrcp.f32 %v284_v18 }
  0x83   : > { %v389_v43 = vsub.f32 %v284_v18, %v363_v34 }
  0x89   : > { %v631_v40 = vpop.eup %630 }
  0x8a   : > { %v633_v44 = vpop.eup %632  ;;  %v383_v45 = vmul.f32 0.6931472, %v631_v40 }
  0x8b   : > { %v635_v46 = vpop.eup %634  ;;  %v391_v47 = vmul.f32 %v633_v44, %v388_v39 }
  0x8c   : > { %v637_v29 = vpop.eup %636  ;;  %v385_v51 = vmul.f32 0.6931472, %v635_v46  ;;  %v386_v52 = vsub.f32 %v380_v42, %v383_v45 }
  0x8d   : > { %v393_v53 = vmul.f32 %v637_v29, %v389_v43  ;;  %v394_v54 = vmul.f32 %v391_v47, %v391_v47 }
  0x8e   : > { %v387_v56 = vsub.f32 %v381_v28, %v385_v51 }
  0x8f   : > { %v395_v25 = vmul.f32 %v393_v53, %v393_v53  ;;  %v398_v57 = vmul.f32 %v396_v48, %v394_v54 }
  0x91   : > { %v399_v59 = vmul.f32 %v397_v55, %v395_v25  ;;  %v400_v60 = vmul.f32 %v398_v57, %v386_v52 }
  0x93   : > { %v401_v30 = vmul.f32 %v399_v59, %v387_v56 }
  0x95   : > { %v404_v62 = vcombine.low %v400_v60, %v401_v30 }
  0x97   : > { %v411_v63 = vrot.slane %v404_v62, %v410_v61 }
  0x99   : > { %v418_v1 = vrot.slane %v411_v63, %v410_v61 }
  0x9b   : > { %424 = vst.msk [vmem:[%s206_s30] sm:$0x3] %vm422_vm3, %v418_v1 }
  0x9c   : > { %691 = shalt.err (!%p688_p7)
}
  0x9d   : > { %s692_s13 = scalar_lea.hbm %s975_s12, 32  ;;  %s696_s6 = scalar_lea.hbm %s1025_s3, 64 }
  0x9e   : > { %p693_p13 = scmp.ne.s32.totalorder %s975_s12, %s692_s13  ;;  %p697_p5 = scmp.lt.u32.totalorder %s975_s12, %s1025_s3 }
  0x9f   : > { %p698_p8 = scmp.lt.u32.totalorder %s696_s6, %s692_s13  ;;  %p700_p11 = scmp.lt.u32.totalorder %s692_s13, %s975_s12 }
  0xa0   : > { %p694_p1 = pnand %p693_p13, %p1034_p0 }
  0xa1   : > { %p699_p12 = por %p698_p8, %p697_p5 }
  0xa2   : > { %p695_p4 = pneg %p694_p1 }
  0xa3   : > { %p701_p3 = por %p700_p11, %p699_p12 }
  0xa5   : > { %p702_p10 = pnand %p701_p3, %p695_p4 }
  0xa7   : > { %705 = shalt.err (!%p702_p10)
}
  0xa8   : > { %564 = dma.vmem_to_hbm [thread:$0]  (%p1034_p0), %s970_s4, 32, %s975_s12, %s426_s14  }
  0xa9 PF: > { %s454_s0 = sand.u32 1, %s742_s22   ;;  %p1035_p2 = scmp.ne.s32.totalorder %s1030_s9, 0 }
  0xaa   : > { %p1036_p6 = scmp.ge.s32.totalorder %s762_s27, 2  ;;  %s455_s28 = scalar_lea.sflag [#allocation6], %s454_s0 }
  0xac   : > { %p571_p9 = pnand %p1036_p6, %p1035_p2 }
  0xae   : > { %737 = dma.done.wait (!%p571_p9), %s455_s28, 32  }
  0xaf   : > { %739 = vsyncadd (!%p571_p9), %s455_s28, 4294967264  ;;  %s23_s27 = sadd.s32 1, %s762_s27   ;;  %s1037_s22 = smov %s746_s23 }
  0xb0   : > { %p20_p7 = scmp.ge.s32.totalorder %s23_s27, 4   ;;  %s1038_s23 = smov %s750_s24 }
  0xb1   : > { %s1039_s24 = smov %s858_s8  ;;  %s1040_s25 = smov %s758_s26 }
  0xb2   : > { %s1041_s26 = smov %s1043_s29  ;;  %22 = sbr.rel (!%p20_p7) target bundleno = 18 (0x12), region = 76 }
  0xb9   :  { %460 = vsyncpa [#allocation5], 1 }
  0xba   :  { %462 = vsyncpa [#allocation5 + $0x1], 1 }
  0xbb   :  { %463 = vsyncpa [#allocation6], 1 }
  0xbc   :  { %465 = vsyncpa [#allocation6 + $0x1], 1 }

</bundles_post_ra>
